<compile_context>
chip_gen: v5e
topology: v5e:2x2
jax: 0.10.0
libtpu: 0.0.40
codegen_flags: <defaults>
</compile_context>

<pallas_src>
import math

import jax
import jax.numpy as jnp
from jax.experimental import pallas as pl
from jax.experimental.pallas import tpu as pltpu

_F32_BYTES = 4


def _make_pe(max_len: int, d_model: int) -> jnp.ndarray:
    """Deterministic sinusoidal positional-encoding table, same math as __init__."""
    assert d_model % 2 == 0, "d_model must be even (matches the PyTorch recipe)"
    position = jnp.arange(max_len, dtype=jnp.float32)[:, None]              # (T, 1)
    div_term = jnp.exp(
        jnp.arange(0, d_model, 2, dtype=jnp.float32) * (-math.log(10000.0) / d_model)
    )                                                                        # (D/2,)
    pe = jnp.zeros((max_len, d_model), dtype=jnp.float32)
    pe = pe.at[:, 0::2].set(jnp.sin(position * div_term))
    pe = pe.at[:, 1::2].set(jnp.cos(position * div_term))
    return pe                                                                # (T, D)


def _round_up(n: int, m: int) -> int:
    return ((n + m - 1) // m) * m


def _vmem_capacity_bytes() -> int:
    """Physical VMEM of the current TPU generation; conservative fallback = v7x 64 MiB."""
    try:
        info = pltpu.get_tpu_info()
        cap = getattr(info, "vmem_capacity_bytes", None)
        if cap:
            return int(cap)
    except Exception:
        pass
    return 64 << 20


def _pe_add_kernel(x_ref, pe_ref, o_ref):
    # x_ref : (b, tT, 1)  in VMEM  (T on sublanes, size-1 lane)
    # pe_ref: (tT, D)     in VMEM  (resident across the batch loop in the unfolded path)
    # o_ref : (b, tT, D)  in VMEM  (full lane-dense stores; D is a multiple of 128)
    o_ref[...] = (x_ref[...] + pe_ref[...][None, :, :]).astype(o_ref.dtype)


def positional_encoding_forward(x: jnp.ndarray, pe: jnp.ndarray, *,
                                t_tile: int | None = None,
                                fold_batch: bool | None = None,
                                out_dtype=jnp.float32) -> jnp.ndarray:
    """x: (B, T) float32, pe: (T, D) float32  ->  (B, T, D) out_dtype."""
    B, T = x.shape
    T2, D = pe.shape
    assert T == T2, "sequence length of x must equal max_len of the PE table"

    vmem_cap = _vmem_capacity_bytes()
    # Output-tile byte budget; total resident footprint is <= ~6x the tile
    # (2x out + 2x pe + 2x lane-padded x buffers), so vmem_cap/8 leaves headroom
    # on every generation (8 MiB on v7x, 12 MiB cap on v5e/v6e).
    tile_budget = max(2 << 20, min(12 << 20, vmem_cap // 8))

    # Lane-dense stores need D % 128 == 0; sublane tiling needs T tiles % 8 == 0.
    D_pad = _round_up(D, 128)
    T8 = _round_up(T, 8)

    # Fold the whole batch into one block whenever even the smallest (B, 8, D) tile fits.
    if fold_batch is None:
        fold_batch = (B * 8 * D_pad * _F32_BYTES) <= tile_budget
    rows_b = B if fold_batch else 1
    row_bytes = rows_b * D_pad * _F32_BYTES

    # Choose the T tile: as large as the budget allows, balanced across tiles so the
    # wrapper padding never exceeds (tT - 8) rows, independent of T's factorization.
    if t_tile is None:
        max_rows = max(8, (tile_budget // row_bytes) // 8 * 8)
        tT_cap = min(T8, max_rows)
        nT = pl.cdiv(T8, tT_cap)
        tT = _round_up(-(-T8 // nT), 8)
    else:
        tT = _round_up(int(t_tile), 8)
        nT = pl.cdiv(T8, tT)
    T_pad = nT * tT

    # Wrapper-side padding (tiny vs. the (B,T,D) output); sliced back after the call.
    x_p = x if T_pad == T else jnp.pad(x, ((0, 0), (0, T_pad - T)))
    pe_p = pe
    if T_pad != T or D_pad != D:
        pe_p = jnp.pad(pe, ((0, T_pad - T), (0, D_pad - D)))
    x3 = x_p[:, :, None]                                                     # (B, T_pad, 1)

    # Double-buffered VMEM footprint.  NB: the (b, tT, 1) x block pads to 128 lanes.
    out_buf = rows_b * tT * D_pad * jnp.dtype(out_dtype).itemsize
    pe_buf = tT * D_pad * _F32_BYTES
    x_buf = rows_b * tT * 128 * _F32_BYTES
    per_step = 2 * (out_buf + pe_buf + x_buf)
    vmem_limit = int(min(max(per_step + (2 << 20), 16 << 20), int(vmem_cap * 0.85)))

    if fold_batch:
        grid = (nT,)
        in_specs = [
            pl.BlockSpec((B, tT, 1), lambda ti: (0, ti, 0)),                 # x  (B, T_pad, 1)
            pl.BlockSpec((tT, D_pad), lambda ti: (ti, 0)),                   # pe (T_pad, D_pad)
        ]
        out_specs = pl.BlockSpec((B, tT, D_pad), lambda ti: (0, ti, 0))      # out
        dim_sem = ("parallel",)
    else:
        # B innermost: pe's block index is constant across it, so its DMA is skipped on
        # consecutive steps (fetched once per T-tile).
        grid = (nT, B)
        in_specs = [
            pl.BlockSpec((1, tT, 1), lambda ti, b: (b, ti, 0)),
            pl.BlockSpec((tT, D_pad), lambda ti, b: (ti, 0)),
        ]
        out_specs = pl.BlockSpec((1, tT, D_pad), lambda ti, b: (b, ti, 0))
        dim_sem = ("parallel", "parallel")

    out_p = pl.pallas_call(
        _pe_add_kernel,
        out_shape=jax.ShapeDtypeStruct((B, T_pad, D_pad), out_dtype),
        grid_spec=pltpu.PrefetchScalarGridSpec(
            num_scalar_prefetch=0,
            grid=grid,
            in_specs=in_specs,
            out_specs=out_specs,
        ),
        compiler_params=pltpu.CompilerParams(
            dimension_semantics=dim_sem,
            vmem_limit_bytes=vmem_limit,
        ),
    )(x3, pe_p)

    if T_pad != T or D_pad != D:
        out_p = out_p[:, :T, :D]
    return out_p


if __name__ == "__main__":
    key = jax.random.PRNGKey(0)
    k1, k2, k3 = jax.random.split(key, 3)

    # 1) Module-default shapes: batch=2, max_len=71, d_model=512 (T padded 71->72,
    #    whole batch folded into a single grid step).
    B, T, D = 2, 71, 512
    x = jax.random.normal(k1, (B, T), dtype=jnp.float32)
    pe = _make_pe(max_len=T, d_model=D)
    out = jax.block_until_ready(positional_encoding_forward(x, pe))
    ref = x[:, :, None] + pe[None, :, :]
    assert out.shape == (B, T, D)
    assert jnp.allclose(out, ref, atol=1e-6, rtol=1e-6)

    # 2) Force a real multi-tile grid on the folded path (4 T-tiles, B folded).
    B2, T2, D2 = 2, 64, 128
    x2 = jax.random.normal(k2, (B2, T2), dtype=jnp.float32)
    pe2 = _make_pe(max_len=T2, d_model=D2)
    out2 = jax.block_until_ready(positional_encoding_forward(x2, pe2, t_tile=16))
    ref2 = x2[:, :, None] + pe2[None, :, :]
    assert out2.shape == (B2, T2, D2)
    assert jnp.allclose(out2, ref2, atol=1e-6, rtol=1e-6)

    # 3) Exercise the unfolded (nT, B) path plus T/D padding (T=35 -> 40, D=96 -> 128).
    B3, T3, D3 = 2, 35, 96
    x3_ = jax.random.normal(k3, (B3, T3), dtype=jnp.float32)
    pe3 = _make_pe(max_len=T3, d_model=D3)
    out3 = jax.block_until_ready(
        positional_encoding_forward(x3_, pe3, fold_batch=False))
    ref3 = x3_[:, :, None] + pe3[None, :, :]
    assert out3.shape == (B3, T3, D3)
    assert jnp.allclose(out3, ref3, atol=1e-6, rtol=1e-6)

    print("KERNEL_OK")
</pallas_src>

<mosaic_0001>
module attributes {stable_mosaic.version = 11 : i64} {
  func.func @_pe_add_kernel(%arg0: i32, %arg1: memref<2x72x1xf32, #tpu.memory_space<vmem>>, %arg2: memref<72x512xf32, #tpu.memory_space<vmem>>, %arg3: memref<2x72x512xf32, #tpu.memory_space<vmem>>) attributes {dimension_semantics = [#tpu.dimension_semantics<parallel>], iteration_bounds = array<i64: 1>, scalar_prefetch = 0 : i64, scratch_operands = 0 : i64, tpu.core_type = #tpu.core_type<tc>, window_params = [{transform_indices = @transform_0, window_bounds = array<i64: 2, 72, 1>}, {transform_indices = @transform_1, window_bounds = array<i64: 72, 512>}, {transform_indices = @transform_2, window_bounds = array<i64: 2, 72, 512>}]} {
    %c0 = arith.constant 0 : index
    %c0_0 = arith.constant 0 : index
    %c0_1 = arith.constant 0 : index
    %0 = vector.load %arg1[%c0, %c0_0, %c0_1] : memref<2x72x1xf32, #tpu.memory_space<vmem>>, vector<2x72x1xf32>
    %c0_2 = arith.constant 0 : index
    %c0_3 = arith.constant 0 : index
    %1 = vector.load %arg2[%c0_2, %c0_3] : memref<72x512xf32, #tpu.memory_space<vmem>>, vector<72x512xf32>
    %2 = vector.shape_cast %1 : vector<72x512xf32> to vector<1x72x512xf32>
    %3 = vector.broadcast %0 : vector<2x72x1xf32> to vector<2x72x512xf32>
    %4 = vector.broadcast %2 : vector<1x72x512xf32> to vector<2x72x512xf32>
    %5 = arith.addf %3, %4 : vector<2x72x512xf32>
    %c0_4 = arith.constant 0 : index
    %c0_5 = arith.constant 0 : index
    %c0_6 = arith.constant 0 : index
    %6 = vector.load %arg3[%c0_4, %c0_5, %c0_6] : memref<2x72x512xf32, #tpu.memory_space<vmem>>, vector<2x72x512xf32>
    tpu.vector_store %arg3[%c0_4, %c0_5, %c0_6], %5 {strides = array<i32>} : memref<2x72x512xf32, #tpu.memory_space<vmem>>, vector<2x72x512xf32>,
    return
  }
  func.func @transform_0(%arg0: i32) -> (i32, i32, i32) {
    %c0_i32 = arith.constant 0 : i32
    %c0_i32_0 = arith.constant 0 : i32
    %c0_i32_1 = arith.constant 0 : i32
    return %c0_i32, %arg0, %c0_i32_0 : i32, i32, i32
  }
  func.func @transform_1(%arg0: i32) -> (i32, i32) {
    %c0_i32 = arith.constant 0 : i32
    %c0_i32_0 = arith.constant 0 : i32
    return %arg0, %c0_i32 : i32, i32
  }
  func.func @transform_2(%arg0: i32) -> (i32, i32, i32) {
    %c0_i32 = arith.constant 0 : i32
    %c0_i32_0 = arith.constant 0 : i32
    %c0_i32_1 = arith.constant 0 : i32
    return %c0_i32, %arg0, %c0_i32_0 : i32, i32, i32
  }
}

</mosaic_0001>

<bundles_post_ra>
// kernel: tpu_custom_call.1
= control target key start
LH: loop header
LB: loop body
LE: loop exit
PB: predicated region body
PF: predicated region fallthrough
CT: control target
= control target key end

     0   :  { %7 = vsyncpa [#allocation3], 0  ;;  %s565_s0 = inlined_call_operand.vmem [shape: f32[2,72,1], index: 0, kind: input, shape index: {}]   ;;  %s566_s1 = inlined_call_operand.hbm [shape: f32[72,512], index: 1, kind: input, shape index: {}]   ;;  %s567_s2 = inlined_call_operand.hbm [shape: f32[2,72,512], index: 2, kind: output, shape index: {}]  }
   0x1   :  { %8 = vsyncpa [#allocation4], 0  ;;  %s15_s11 = sshll.u32 %s566_s1, 4  ;;  %s395_s12 = smov [#allocation2]   ;;  %s16_s11 = int_to_ptr.hbm [resolvable:$true] %s15_s11 }
   0x2   :  { %s17_s13 = sshll.u32 %s395_s12, 4  ;;  %s396_s14 = smov 512   ;;  %s18_s13 = int_to_ptr.vmem [resolvable:$true] %s17_s13 }
   0x3   :  { %s397_s15 = smov 32  }
   0x4   :  { %23 = dma.hbm_to_vmem [thread:$0]  %s16_s11, 4608, %s18_s13, [#allocation3], %s396_s14, %s396_s14, %s397_s15  }
   0x5   :  { %391 = dma.done.wait [#allocation3], 4608  }
   0x6   :  { %392 = vsyncadd [#allocation3], 4294962688  ;;  %v398_v0 = vmov 0   ;;  %v32_v1 = vld [vmem:[%s565_s0 + $0x20] sm:$0xff]  ;;  %v30_v2 = vld [vmem:[%s565_s0 + $0x10] sm:$0xff]  ;;  %s322_s27 = sshll.u32 %s567_s2, 4  ;;  %s323_s27 = int_to_ptr.hbm [resolvable:$true] %s322_s27 }
   0x7   :  { %342 = vset.pattern.permute.xlu2 %v398_v0  ;;  %341 = vset.pattern.permute.xlu1 %v398_v0  ;;  %v28_v3 = vld [vmem:[%s565_s0] sm:$0xff]  ;;  %v33_v4 = vld [vmem:[%s565_s0 + $0x28] sm:$0xff]  ;;  %v31_v5 = vld [vmem:[%s565_s0 + $0x18] sm:$0xff] }
   0x8   :  { %340 = vset.pattern.permute.xlu0 %v398_v0  ;;  %104 = vperm.xlu2 %342, %v32_v1   ;;  %v29_v6 = vld [vmem:[%s565_s0 + $0x8] sm:$0xff]  ;;  %v36_v7 = vld [vmem:[%s565_s0 + $0x40] sm:$0xff]  ;;  %v35_v8 = vld [vmem:[%s565_s0 + $0x38] sm:$0xff] }
   0x9   :  { %94 = vperm.xlu1 %341, %v30_v2   ;;  %84 = vperm.xlu0 %340, %v28_v3   ;;  %v34_v9 = vld [vmem:[%s565_s0 + $0x30] sm:$0xff]  ;;  %v39_v10 = vld [vmem:[%s565_s0 + $0x58] sm:$0xff]  ;;  %v37_v12 = vld [vmem:[%s565_s0 + $0x48] sm:$0xff] }
   0xa   :  { %v38_v11 = vld [vmem:[%s565_s0 + $0x50] sm:$0xff]  ;;  %v41_v14 = vld [vmem:[%s565_s0 + $0x68] sm:$0xff]  ;;  %v40_v15 = vld [vmem:[%s565_s0 + $0x60] sm:$0xff] }
   0xb   :  { %v42_v13 = vld [vmem:[%s565_s0 + $0x70] sm:$0xff]  ;;  %v45_v16 = vld [vmem:[%s565_s0 + $0x88] sm:$0xff]  ;;  %v44_v17 = vld [vmem:[%s565_s0 + $0x80] sm:$0xff] }
   0xc   :  { %v43_v18 = vld [vmem:[%s565_s0 + $0x78] sm:$0xff]  ;;  %v475_v19 = vld [vmem:[#allocation2 + $0x80] sm:$0xff]  ;;  %v477_v20 = vld [vmem:[#allocation2 + $0x88] sm:$0xff]  ;;  %s399_s0 = smov [#allocation5]  }
   0xd   :  { %v479_v21 = vld [vmem:[#allocation2 + $0x90] sm:$0xff]  ;;  %v481_v22 = vld [vmem:[#allocation2 + $0x98] sm:$0xff]  ;;  %v66_v28 = vld [vmem:[#allocation2 + $0xa0] sm:$0xff]  ;;  %s320_s24 = sshll.u32 %s399_s0, 4  ;;  %s321_s24 = int_to_ptr.vmem [resolvable:$true] %s320_s24 }
   0xe   :  { %v67_v29 = vld [vmem:[#allocation2 + $0xa8] sm:$0xff]  ;;  %v487_v30 = vld [vmem:[#allocation2 + $0xb0] sm:$0xff]  ;;  %v489_v31 = vld [vmem:[#allocation2 + $0xb8] sm:$0xff] }
   0xf   :  { %v493_v37 = vld [vmem:[#allocation2 + $0x100] sm:$0xff]  ;;  %v495_v38 = vld [vmem:[#allocation2 + $0x108] sm:$0xff]  ;;  %v497_v39 = vld [vmem:[#allocation2 + $0x110] sm:$0xff] }
  0x10   :  { %109 = vperm.xlu2 %342, %v33_v4   ;;  %v499_v40 = vld [vmem:[#allocation2 + $0x118] sm:$0xff]  ;;  %v54_v46 = vld [vmem:[#allocation2 + $0x40] sm:$0xff]  ;;  %v55_v47 = vld [vmem:[#allocation2 + $0x48] sm:$0xff] }
  0x11   :  { %99 = vperm.xlu1 %341, %v31_v5   ;;  %89 = vperm.xlu0 %340, %v29_v6   ;;  %v56_v48 = vld [vmem:[#allocation2 + $0x50] sm:$0xff]  ;;  %v57_v49 = vld [vmem:[#allocation2 + $0x58] sm:$0xff]  ;;  %v505_v59 = vld [vmem:[#allocation2] sm:$0xff] }
  0x12   :  { %v507_v61 = vld [vmem:[#allocation2 + $0x8] sm:$0xff]  ;;  %v509_v63 = vld [vmem:[#allocation2 + $0x10] sm:$0xff]  ;;  %v511_v0 = vld [vmem:[#allocation2 + $0x18] sm:$0xff] }
  0x18   :  { %124 = vperm.xlu2 %342, %v36_v7  }
  0x19   :  { %119 = vperm.xlu1 %341, %v35_v8   ;;  %114 = vperm.xlu0 %340, %v34_v9  }
  0x20   :  { %139 = vperm.xlu2 %342, %v39_v10   ;;  %v517_v10 = vld [vmem:[#allocation2 + $0x60] sm:$0xff] }
  0x21   :  { %134 = vperm.xlu1 %341, %v38_v11   ;;  %129 = vperm.xlu0 %340, %v37_v12   ;;  %v520_v12 = vld [vmem:[#allocation2 + $0x68] sm:$0xff] }
  0x28   :  { %154 = vperm.xlu2 %342, %v42_v13  }
  0x29   :  { %149 = vperm.xlu1 %341, %v41_v14   ;;  %144 = vperm.xlu0 %340, %v40_v15   ;;  %v523_v14 = vld [vmem:[#allocation2 + $0x70] sm:$0xff]  ;;  %v525_v15 = vld [vmem:[#allocation2 + $0x78] sm:$0xff] }
  0x30   :  { %169 = vperm.xlu2 %342, %v45_v16  }
  0x31   :  { %164 = vperm.xlu1 %341, %v44_v17   ;;  %159 = vperm.xlu0 %340, %v43_v18   ;;  %v50_v18 = vld [vmem:[#allocation2 + $0x20] sm:$0xff] }
  0x62   :  { %v105_v23 = vpop.permute.xlu2 %104 }
  0x63   :  { %v188_v24 = vadd.f32 %v105_v23, %v475_v19  ;;  %v189_v25 = vadd.f32 %v105_v23, %v477_v20  ;;  %v190_v26 = vadd.f32 %v105_v23, %v479_v21  ;;  %v191_v27 = vadd.f32 %v105_v23, %v481_v22 }
  0x65   :  { %260 = vst [vmem:[#allocation5 + $0x80] sm:$0xff] %v188_v24 }
  0x66   :  { %261 = vst [vmem:[#allocation5 + $0x88] sm:$0xff] %v189_v25  ;;  %v51_v25 = vld [vmem:[#allocation2 + $0x28] sm:$0xff] }
  0x67   :  { %262 = vst [vmem:[#allocation5 + $0x90] sm:$0xff] %v190_v26 }
  0x68   :  { %263 = vst [vmem:[#allocation5 + $0x98] sm:$0xff] %v191_v27 }
  0x6a   :  { %v110_v32 = vpop.permute.xlu2 %109 }
  0x6b   :  { %v192_v33 = vadd.f32 %v110_v32, %v66_v28  ;;  %v193_v34 = vadd.f32 %v110_v32, %v67_v29  ;;  %v194_v35 = vadd.f32 %v110_v32, %v487_v30  ;;  %v195_v36 = vadd.f32 %v110_v32, %v489_v31 }
  0x6d   :  { %264 = vst [vmem:[#allocation5 + $0xa0] sm:$0xff] %v192_v33 }
  0x6e   :  { %265 = vst [vmem:[#allocation5 + $0xa8] sm:$0xff] %v193_v34 }
  0x6f   :  { %266 = vst [vmem:[#allocation5 + $0xb0] sm:$0xff] %v194_v35 }
  0x70   :  { %267 = vst [vmem:[#allocation5 + $0xb8] sm:$0xff] %v195_v36 }
  0x72   :  { %v125_v41 = vpop.permute.xlu2 %124 }
  0x73   :  { %v204_v42 = vadd.f32 %v125_v41, %v493_v37  ;;  %v205_v43 = vadd.f32 %v125_v41, %v495_v38  ;;  %v206_v44 = vadd.f32 %v125_v41, %v497_v39  ;;  %v207_v45 = vadd.f32 %v125_v41, %v499_v40 }
  0x75   :  { %276 = vst [vmem:[#allocation5 + $0x100] sm:$0xff] %v204_v42 }
  0x76   :  { %277 = vst [vmem:[#allocation5 + $0x108] sm:$0xff] %v205_v43 }
  0x77   :  { %278 = vst [vmem:[#allocation5 + $0x110] sm:$0xff] %v206_v44 }
  0x78   :  { %279 = vst [vmem:[#allocation5 + $0x118] sm:$0xff] %v207_v45 }
  0x7a   :  { %v140_v50 = vpop.permute.xlu2 %139 }
  0x7b   :  { %v95_v51 = vpop.permute.xlu1 %94  ;;  %v216_v52 = vadd.f32 %v140_v50, %v54_v46  ;;  %v217_v53 = vadd.f32 %v140_v50, %v55_v47  ;;  %v218_v54 = vadd.f32 %v140_v50, %v56_v48  ;;  %v85_v55 = vpop.permute.xlu0 %84  ;;  %v219_v56 = vadd.f32 %v140_v50, %v57_v49 }
  0x7c   :  { %v180_v57 = vadd.f32 %v95_v51, %v54_v46  ;;  %v181_v58 = vadd.f32 %v95_v51, %v55_v47  ;;  %v182_v60 = vadd.f32 %v95_v51, %v56_v48  ;;  %v183_v62 = vadd.f32 %v95_v51, %v57_v49 }
  0x7d   :  { %288 = vst [vmem:[#allocation5 + $0x160] sm:$0xff] %v216_v52  ;;  %v172_v1 = vadd.f32 %v85_v55, %v505_v59  ;;  %v173_v2 = vadd.f32 %v85_v55, %v507_v61  ;;  %v174_v5 = vadd.f32 %v85_v55, %v509_v63  ;;  %v175_v7 = vadd.f32 %v85_v55, %v511_v0 }
  0x7e   :  { %289 = vst [vmem:[#allocation5 + $0x168] sm:$0xff] %v217_v53 }
  0x7f   :  { %290 = vst [vmem:[#allocation5 + $0x170] sm:$0xff] %v218_v54 }
  0x80   :  { %291 = vst [vmem:[#allocation5 + $0x178] sm:$0xff] %v219_v56 }
  0x81   :  { %252 = vst [vmem:[#allocation5 + $0x40] sm:$0xff] %v180_v57  ;;  %v74_v57 = vld [vmem:[#allocation2 + $0xe0] sm:$0xff] }
  0x82   :  { %253 = vst [vmem:[#allocation5 + $0x48] sm:$0xff] %v181_v58  ;;  %v155_v3 = vpop.permute.xlu2 %154  ;;  %v75_v58 = vld [vmem:[#allocation2 + $0xe8] sm:$0xff] }
  0x83   :  { %v100_v4 = vpop.permute.xlu1 %99  ;;  %254 = vst [vmem:[#allocation5 + $0x50] sm:$0xff] %v182_v60  ;;  %v90_v6 = vpop.permute.xlu0 %89  ;;  %v228_v8 = vadd.f32 %v155_v3, %v66_v28  ;;  %v229_v9 = vadd.f32 %v155_v3, %v67_v29  ;;  %v230_v11 = vadd.f32 %v155_v3, %v487_v30  ;;  %v231_v13 = vadd.f32 %v155_v3, %v489_v31  ;;  %v52_v28 = vld [vmem:[#allocation2 + $0x30] sm:$0xff]  ;;  %v53_v29 = vld [vmem:[#allocation2 + $0x38] sm:$0xff] }
  0x84   :  { %255 = vst [vmem:[#allocation5 + $0x58] sm:$0xff] %v183_v62  ;;  %v184_v16 = vadd.f32 %v100_v4, %v517_v10  ;;  %v185_v17 = vadd.f32 %v100_v4, %v520_v12  ;;  %v186_v24 = vadd.f32 %v100_v4, %v523_v14  ;;  %v187_v27 = vadd.f32 %v100_v4, %v525_v15  ;;  %v71_v4 = vld [vmem:[#allocation2 + $0xc8] sm:$0xff] }
  0x85   :  { %244 = vst [vmem:[#allocation5] sm:$0xff] %v172_v1  ;;  %v176_v30 = vadd.f32 %v90_v6, %v50_v18  ;;  %v177_v31 = vadd.f32 %v90_v6, %v51_v25  ;;  %v178_v33 = vadd.f32 %v90_v6, %v52_v28  ;;  %v179_v34 = vadd.f32 %v90_v6, %v53_v29  ;;  %v72_v6 = vld [vmem:[#allocation2 + $0xd0] sm:$0xff] }
  0x86   :  { %245 = vst [vmem:[#allocation5 + $0x8] sm:$0xff] %v173_v2  ;;  %v70_v2 = vld [vmem:[#allocation2 + $0xc0] sm:$0xff] }
  0x87   :  { %246 = vst [vmem:[#allocation5 + $0x10] sm:$0xff] %v174_v5 }
  0x88   :  { %247 = vst [vmem:[#allocation5 + $0x18] sm:$0xff] %v175_v7  ;;  %v73_v7 = vld [vmem:[#allocation2 + $0xd8] sm:$0xff] }
  0x89   :  { %300 = vst [vmem:[#allocation5 + $0x1c0] sm:$0xff] %v228_v8 }
  0x8a   :  { %301 = vst [vmem:[#allocation5 + $0x1c8] sm:$0xff] %v229_v9  ;;  %v170_v32 = vpop.permute.xlu2 %169 }
  0x8b   :  { %v529_v23 = vpop.permute.xlu1 %119  ;;  %302 = vst [vmem:[#allocation5 + $0x1d0] sm:$0xff] %v230_v11  ;;  %v532_v26 = vpop.permute.xlu0 %114  ;;  %v240_v35 = vadd.f32 %v170_v32, %v493_v37  ;;  %v241_v36 = vadd.f32 %v170_v32, %v495_v38  ;;  %v242_v42 = vadd.f32 %v170_v32, %v497_v39  ;;  %v243_v43 = vadd.f32 %v170_v32, %v499_v40 }
  0x8c   :  { %303 = vst [vmem:[#allocation5 + $0x1d8] sm:$0xff] %v231_v13  ;;  %v200_v60 = vadd.f32 %v529_v23, %v74_v57  ;;  %v196_v8 = vadd.f32 %v532_v26, %v70_v2  ;;  %v197_v9 = vadd.f32 %v532_v26, %v71_v4  ;;  %v198_v11 = vadd.f32 %v532_v26, %v72_v6 }
  0x8d   :  { %256 = vst [vmem:[#allocation5 + $0x60] sm:$0xff] %v184_v16 }
  0x8e   :  { %257 = vst [vmem:[#allocation5 + $0x68] sm:$0xff] %v185_v17 }
  0x8f   :  { %258 = vst [vmem:[#allocation5 + $0x70] sm:$0xff] %v186_v24 }
  0x90   :  { %259 = vst [vmem:[#allocation5 + $0x78] sm:$0xff] %v187_v27 }
  0x91   :  { %248 = vst [vmem:[#allocation5 + $0x20] sm:$0xff] %v176_v30 }
  0x92   :  { %249 = vst [vmem:[#allocation5 + $0x28] sm:$0xff] %v177_v31 }
  0x93   :  { %v135_v41 = vpop.permute.xlu1 %134  ;;  %250 = vst [vmem:[#allocation5 + $0x30] sm:$0xff] %v178_v33  ;;  %v130_v44 = vpop.permute.xlu0 %129 }
  0x94   :  { %251 = vst [vmem:[#allocation5 + $0x38] sm:$0xff] %v179_v34  ;;  %v212_v45 = vadd.f32 %v135_v41, %v50_v18  ;;  %v213_v46 = vadd.f32 %v135_v41, %v51_v25  ;;  %v214_v47 = vadd.f32 %v135_v41, %v52_v28  ;;  %v215_v48 = vadd.f32 %v135_v41, %v53_v29 }
  0x95   :  { %312 = vst [vmem:[#allocation5 + $0x220] sm:$0xff] %v240_v35  ;;  %v208_v37 = vadd.f32 %v130_v44, %v505_v59  ;;  %v209_v38 = vadd.f32 %v130_v44, %v507_v61  ;;  %v210_v39 = vadd.f32 %v130_v44, %v509_v63  ;;  %v211_v40 = vadd.f32 %v130_v44, %v511_v0  ;;  %v76_v59 = vld [vmem:[#allocation2 + $0xf0] sm:$0xff] }
  0x96   :  { %313 = vst [vmem:[#allocation5 + $0x228] sm:$0xff] %v241_v36  ;;  %v202_v62 = vadd.f32 %v529_v23, %v76_v59 }
  0x97   :  { %314 = vst [vmem:[#allocation5 + $0x230] sm:$0xff] %v242_v42 }
  0x98   :  { %315 = vst [vmem:[#allocation5 + $0x238] sm:$0xff] %v243_v43 }
  0x99   :  { %284 = vst [vmem:[#allocation5 + $0x140] sm:$0xff] %v212_v45 }
  0x9a   :  { %285 = vst [vmem:[#allocation5 + $0x148] sm:$0xff] %v213_v46 }
  0x9b   :  { %v150_v49 = vpop.permute.xlu1 %149  ;;  %286 = vst [vmem:[#allocation5 + $0x150] sm:$0xff] %v214_v47  ;;  %v145_v52 = vpop.permute.xlu0 %144 }
  0x9c   :  { %287 = vst [vmem:[#allocation5 + $0x158] sm:$0xff] %v215_v48  ;;  %v224_v50 = vadd.f32 %v150_v49, %v475_v19  ;;  %v225_v51 = vadd.f32 %v150_v49, %v477_v20  ;;  %v226_v53 = vadd.f32 %v150_v49, %v479_v21  ;;  %v227_v54 = vadd.f32 %v150_v49, %v481_v22  ;;  %v77_v21 = vld [vmem:[#allocation2 + $0xf8] sm:$0xff] }
  0x9d   :  { %280 = vst [vmem:[#allocation5 + $0x120] sm:$0xff] %v208_v37  ;;  %v220_v55 = vadd.f32 %v145_v52, %v517_v10  ;;  %v221_v56 = vadd.f32 %v145_v52, %v520_v12  ;;  %v222_v19 = vadd.f32 %v145_v52, %v523_v14  ;;  %v223_v20 = vadd.f32 %v145_v52, %v525_v15 }
  0x9e   :  { %281 = vst [vmem:[#allocation5 + $0x128] sm:$0xff] %v209_v38  ;;  %v201_v22 = vadd.f32 %v529_v23, %v75_v58  ;;  %v203_v63 = vadd.f32 %v529_v23, %v77_v21  ;;  %v199_v12 = vadd.f32 %v532_v26, %v73_v7 }
  0x9f   :  { %282 = vst [vmem:[#allocation5 + $0x130] sm:$0xff] %v210_v39 }
  0xa0   :  { %283 = vst [vmem:[#allocation5 + $0x138] sm:$0xff] %v211_v40 }
  0xa1   :  { %296 = vst [vmem:[#allocation5 + $0x1a0] sm:$0xff] %v224_v50 }
  0xa2   :  { %297 = vst [vmem:[#allocation5 + $0x1a8] sm:$0xff] %v225_v51 }
  0xa3   :  { %298 = vst [vmem:[#allocation5 + $0x1b0] sm:$0xff] %v226_v53  ;;  %v165_v61 = vpop.permute.xlu1 %164  ;;  %v160_v10 = vpop.permute.xlu0 %159 }
  0xa4   :  { %299 = vst [vmem:[#allocation5 + $0x1b8] sm:$0xff] %v227_v54  ;;  %v236_v0 = vadd.f32 %v165_v61, %v74_v57  ;;  %v237_v1 = vadd.f32 %v165_v61, %v75_v58  ;;  %v238_v3 = vadd.f32 %v165_v61, %v76_v59  ;;  %v239_v5 = vadd.f32 %v165_v61, %v77_v21 }
  0xa5   :  { %292 = vst [vmem:[#allocation5 + $0x180] sm:$0xff] %v220_v55  ;;  %v232_v13 = vadd.f32 %v160_v10, %v70_v2  ;;  %v233_v14 = vadd.f32 %v160_v10, %v71_v4  ;;  %v234_v15 = vadd.f32 %v160_v10, %v72_v6  ;;  %v235_v16 = vadd.f32 %v160_v10, %v73_v7 }
  0xa6   :  { %293 = vst [vmem:[#allocation5 + $0x188] sm:$0xff] %v221_v56 }
  0xa7   :  { %294 = vst [vmem:[#allocation5 + $0x190] sm:$0xff] %v222_v19 }
  0xa8   :  { %295 = vst [vmem:[#allocation5 + $0x198] sm:$0xff] %v223_v20 }
  0xa9   :  { %272 = vst [vmem:[#allocation5 + $0xe0] sm:$0xff] %v200_v60 }
  0xaa   :  { %273 = vst [vmem:[#allocation5 + $0xe8] sm:$0xff] %v201_v22 }
  0xab   :  { %274 = vst [vmem:[#allocation5 + $0xf0] sm:$0xff] %v202_v62 }
  0xac   :  { %275 = vst [vmem:[#allocation5 + $0xf8] sm:$0xff] %v203_v63 }
  0xad   :  { %308 = vst [vmem:[#allocation5 + $0x200] sm:$0xff] %v236_v0 }
  0xae   :  { %309 = vst [vmem:[#allocation5 + $0x208] sm:$0xff] %v237_v1 }
  0xaf   :  { %310 = vst [vmem:[#allocation5 + $0x210] sm:$0xff] %v238_v3 }
  0xb0   :  { %311 = vst [vmem:[#allocation5 + $0x218] sm:$0xff] %v239_v5 }
  0xb1   :  { %268 = vst [vmem:[#allocation5 + $0xc0] sm:$0xff] %v196_v8 }
  0xb2   :  { %269 = vst [vmem:[#allocation5 + $0xc8] sm:$0xff] %v197_v9 }
  0xb3   :  { %270 = vst [vmem:[#allocation5 + $0xd0] sm:$0xff] %v198_v11 }
  0xb4   :  { %271 = vst [vmem:[#allocation5 + $0xd8] sm:$0xff] %v199_v12 }
  0xb5   :  { %304 = vst [vmem:[#allocation5 + $0x1e0] sm:$0xff] %v232_v13 }
  0xb6   :  { %305 = vst [vmem:[#allocation5 + $0x1e8] sm:$0xff] %v233_v14 }
  0xb7   :  { %306 = vst [vmem:[#allocation5 + $0x1f0] sm:$0xff] %v234_v15 }
  0xb8   :  { %307 = vst [vmem:[#allocation5 + $0x1f8] sm:$0xff] %v235_v16 }
  0xb9   :  { %328 = dma.vmem_to_hbm [thread:$0]  %s321_s24, 9216, %s323_s27, [#allocation4], %s396_s14, %s396_s14, %s397_s15  }
  0xba   :  { %393 = dma.done.wait [#allocation4], 9216  }
  0xbb   :  { %394 = vsyncadd [#allocation4], 4294958080 }
  0xbc   :  { %333 = vsyncpa [#allocation3], 1 }
  0xbd   :  { %334 = vsyncpa [#allocation4], 1 }

</bundles_post_ra>
